<compile_context>
chip_gen: v5e
topology: v5e:2x2
jax: 0.10.0
libtpu: 0.0.40
codegen_flags: <defaults>
</compile_context>

<pallas_src>
import jax
import jax.numpy as jnp
from jax import lax
from jax.experimental import pallas as pl
from jax.experimental.pallas import tpu as pltpu

# Lanes per in-kernel chunk: (H=32, 256) f32 intermediates are 8 vregs each, so
# h1 + h2 + temporaries stay comfortably inside the 64-vreg file.
_CHUNK = 256


def _round_up(x, m):
    return ((x + m - 1) // m) * m


def sinusoidal_net_kernel(x_ref, w1_ref, b1_ref, w2_ref, b2_ref, w3_ref, b3_ref,
                          o_ref):
    input_dim, tb = x_ref.shape
    chunk = min(_CHUNK, tb)
    n_chunks = tb // chunk          # wrapper guarantees chunk | tb

    # Hoisted above the chunk loop: one load per grid step.  Do NOT reload /
    # re-broadcast these inside the loop body (JAX does not CSE broadcast_in_dim).
    w1 = w1_ref[...]                # (H, input_dim)
    b1 = b1_ref[...]                # (H, 1)
    w2 = w2_ref[...]                # (H, H)      -- held for the MXU
    b2 = b2_ref[...]                # (H, 1)
    w3 = w3_ref[...]                # (H, 1)
    b3 = b3_ref[...]                # (1, 1)

    def chunk_body(c, carry):
        off = pl.multiple_of(c * chunk, 128)
        x_c = x_ref[:, pl.ds(off, chunk)]            # (input_dim, chunk)

        # linear1 + relu.  For input_dim == 1 this is a pure VPU broadcast
        # outer product (H,1)*(1,chunk); no MXU push for a K=1 contraction.
        if input_dim == 1:
            h1 = w1 * x_c
        else:
            h1 = jnp.dot(w1, x_c, preferred_element_type=jnp.float32)
        h1 = jnp.maximum(h1 + b1, 0.0)               # (H, chunk)

        # linear2 + relu: the one real matmul (MXU).
        h2 = jnp.dot(w2, h1, preferred_element_type=jnp.float32)
        h2 = jnp.maximum(h2 + b2, 0.0)               # (H, chunk)

        # linear3 (hidden -> 1): fused multiply + sublane reduce -> lane-dense row.
        out = jnp.sum(h2 * w3, axis=0, keepdims=True) + b3   # (1, chunk)
        o_ref[:, pl.ds(off, chunk)] = out.astype(o_ref.dtype)
        return carry

    if n_chunks == 1:
        chunk_body(0, None)
    else:
        lax.fori_loop(0, n_chunks, chunk_body, None)


def sinusoidal_net_forward(x, params, *, block_batch=32768):
    """x: [B, input_dim] float32.  Returns [B] (the squeeze(1) of [B, 1])."""
    B, input_dim = x.shape
    H = params["w1"].shape[0]

    # --- batch tiling ------------------------------------------------------
    b128 = _round_up(max(B, 1), 128)
    if b128 <= _CHUNK:
        tb, nsteps = b128, 1
    else:
        bc = _round_up(b128, _CHUNK)                       # chunk-aligned batch
        tb = min(_round_up(block_batch, _CHUNK), bc)
        if bc >= 2 * _CHUNK:
            # Keep >= 2 grid steps so the "parallel" axis gives v7x's second
            # TensorCore work (no effect on single-TC v5e/v6e).
            tb = min(tb, _round_up(pl.cdiv(bc, 2), _CHUNK))
        nsteps = pl.cdiv(bc, tb)
        tb = _round_up(pl.cdiv(bc, nsteps), _CHUNK)        # rebalance -> minimal pad
    b_pad = tb * nsteps
    grid = (nsteps,)

    # Layout plumbing only: batch on the lane axis, pad only the remainder.
    x_t = x.reshape(1, B) if input_dim == 1 else x.T       # (input_dim, B)
    if b_pad != B:
        x_t = jnp.pad(x_t, ((0, 0), (0, b_pad - B)))

    # --- explicit VMEM budget (safe across v5e / v6e / v7x) ----------------
    tile_bytes = 4 * tb * (input_dim + 1)                  # x tile + out tile, f32
    weight_bytes = 4 * (H * input_dim + 3 * H + H * H + 1)
    vmem_limit = int(min(max(4 * tile_bytes + weight_bytes + (2 << 20), 16 << 20),
                         48 << 20))

    out = pl.pallas_call(
        sinusoidal_net_kernel,
        out_shape=jax.ShapeDtypeStruct((1, b_pad), jnp.float32),
        grid_spec=pltpu.PrefetchScalarGridSpec(
            num_scalar_prefetch=0,
            grid=grid,
            in_specs=[
                # x^T: pipelined over the batch grid.
                pl.BlockSpec((input_dim, tb), lambda i: (0, i)),
                # Weights / biases: constant block index -> DMA'd once, resident.
                pl.BlockSpec((H, input_dim), lambda i: (0, 0)),
                pl.BlockSpec((H, 1), lambda i: (0, 0)),
                pl.BlockSpec((H, H), lambda i: (0, 0)),
                pl.BlockSpec((H, 1), lambda i: (0, 0)),
                pl.BlockSpec((H, 1), lambda i: (0, 0)),
                pl.BlockSpec((1, 1), lambda i: (0, 0)),
            ],
            out_specs=pl.BlockSpec((1, tb), lambda i: (0, i)),
        ),
        compiler_params=pltpu.CompilerParams(
            dimension_semantics=("parallel",),   # shard batch tiles across TCs (v7x)
            vmem_limit_bytes=vmem_limit,
        ),
    )(x_t, params["w1"], params["b1"], params["w2"], params["b2"],
      params["w3"], params["b3"])

    return out[0, :B]        # drop padding; this is the squeeze(1) glue


def init_params(key, input_dim, hidden_dim):
    """Deterministic init (uniform, PyTorch-Linear-style bounds)."""
    ks = jax.random.split(key, 6)

    def unif(k, shape, fan_in):
        bound = 1.0 / (float(fan_in) ** 0.5)
        return jax.random.uniform(k, shape, jnp.float32, -bound, bound)

    return {
        "w1": unif(ks[0], (hidden_dim, input_dim), input_dim),   # [out, in]
        "b1": unif(ks[1], (hidden_dim, 1), input_dim),
        "w2": unif(ks[2], (hidden_dim, hidden_dim), hidden_dim),  # [out, in]
        "b2": unif(ks[3], (hidden_dim, 1), hidden_dim),
        "w3": unif(ks[4], (hidden_dim, 1), hidden_dim),           # linear3.weight^T
        "b3": unif(ks[5], (1, 1), hidden_dim),
    }


def reference_forward(x, params):
    """Pure-JAX reference (mirrors the PyTorch module)."""
    h1 = jnp.maximum(x @ params["w1"].T + params["b1"].T, 0.0)
    h2 = jnp.maximum(h1 @ params["w2"].T + params["b2"].T, 0.0)
    return (h2 @ params["w3"] + params["b3"])[:, 0]


if __name__ == "__main__":
    key = jax.random.PRNGKey(0)
    k_x, k_x2, k_p = jax.random.split(key, 3)

    input_dim, hidden_dim = 1, 32
    params = init_params(k_p, input_dim, hidden_dim)

    # Small batch (typical MAML sinusoid task size) -> single step, single chunk.
    batch = 8
    x = jax.random.uniform(k_x, (batch, input_dim), jnp.float32, -5.0, 5.0)
    y = jax.block_until_ready(sinusoidal_net_forward(x, params))
    assert y.shape == (batch,), y.shape
    assert jnp.allclose(y, reference_forward(x, params), atol=1e-5, rtol=1e-5)

    # Larger batch: exercises 2 grid steps (megacore split) and the in-kernel
    # multi-chunk fori_loop with resident weights and pipelined x/out tiles.
    big = 2304
    x_big = jax.random.uniform(k_x2, (big, input_dim), jnp.float32, -5.0, 5.0)
    y_big = jax.block_until_ready(sinusoidal_net_forward(x_big, params))
    assert y_big.shape == (big,), y_big.shape
    assert jnp.allclose(y_big, reference_forward(x_big, params), atol=1e-4, rtol=1e-4)

    print("KERNEL_OK")
</pallas_src>

<mosaic_0001>
module attributes {stable_mosaic.version = 11 : i64} {
  func.func @sinusoidal_net_kernel(%arg0: i32, %arg1: memref<1x128xf32, #tpu.memory_space<vmem>>, %arg2: memref<32x1xf32, #tpu.memory_space<vmem>>, %arg3: memref<32x1xf32, #tpu.memory_space<vmem>>, %arg4: memref<32x32xf32, #tpu.memory_space<vmem>>, %arg5: memref<32x1xf32, #tpu.memory_space<vmem>>, %arg6: memref<32x1xf32, #tpu.memory_space<vmem>>, %arg7: memref<1x1xf32, #tpu.memory_space<vmem>>, %arg8: memref<1x128xf32, #tpu.memory_space<vmem>>) attributes {dimension_semantics = [#tpu.dimension_semantics<parallel>], iteration_bounds = array<i64: 1>, scalar_prefetch = 0 : i64, scratch_operands = 0 : i64, tpu.core_type = #tpu.core_type<tc>, window_params = [{transform_indices = @transform_0, window_bounds = array<i64: 1, 128>}, {pipeline_mode = #tpu.pipeline_mode<synchronous>, transform_indices = @transform_1, window_bounds = array<i64: 32, 1>}, {pipeline_mode = #tpu.pipeline_mode<synchronous>, transform_indices = @transform_2, window_bounds = array<i64: 32, 1>}, {pipeline_mode = #tpu.pipeline_mode<synchronous>, transform_indices = @transform_3, window_bounds = array<i64: 32, 32>}, {pipeline_mode = #tpu.pipeline_mode<synchronous>, transform_indices = @transform_4, window_bounds = array<i64: 32, 1>}, {pipeline_mode = #tpu.pipeline_mode<synchronous>, transform_indices = @transform_5, window_bounds = array<i64: 32, 1>}, {pipeline_mode = #tpu.pipeline_mode<synchronous>, transform_indices = @transform_6, window_bounds = array<i64: 1, 1>}, {transform_indices = @transform_7, window_bounds = array<i64: 1, 128>}]} {
    %c0 = arith.constant 0 : index
    %c0_0 = arith.constant 0 : index
    %0 = vector.load %arg2[%c0, %c0_0] : memref<32x1xf32, #tpu.memory_space<vmem>>, vector<32x1xf32>
    %c0_1 = arith.constant 0 : index
    %c0_2 = arith.constant 0 : index
    %1 = vector.load %arg3[%c0_1, %c0_2] : memref<32x1xf32, #tpu.memory_space<vmem>>, vector<32x1xf32>
    %c0_3 = arith.constant 0 : index
    %c0_4 = arith.constant 0 : index
    %2 = vector.load %arg4[%c0_3, %c0_4] : memref<32x32xf32, #tpu.memory_space<vmem>>, vector<32x32xf32>
    %c0_5 = arith.constant 0 : index
    %c0_6 = arith.constant 0 : index
    %3 = vector.load %arg5[%c0_5, %c0_6] : memref<32x1xf32, #tpu.memory_space<vmem>>, vector<32x1xf32>
    %c0_7 = arith.constant 0 : index
    %c0_8 = arith.constant 0 : index
    %4 = vector.load %arg6[%c0_7, %c0_8] : memref<32x1xf32, #tpu.memory_space<vmem>>, vector<32x1xf32>
    %c0_9 = arith.constant 0 : index
    %c0_10 = arith.constant 0 : index
    %5 = vector.load %arg7[%c0_9, %c0_10] : memref<1x1xf32, #tpu.memory_space<vmem>>, vector<1x1xf32>
    %c0_i32 = arith.constant 0 : i32
    %6 = tpu.assume_multiple %c0_i32, 128 : i32
    %c0_11 = arith.constant 0 : index
    %7 = arith.index_cast %6 : i32 to index
    %8 = vector.load %arg1[%c0_11, %7] : memref<1x128xf32, #tpu.memory_space<vmem>>, vector<1x128xf32>
    %9 = vector.broadcast %0 : vector<32x1xf32> to vector<32x128xf32>
    %10 = vector.broadcast %8 : vector<1x128xf32> to vector<32x128xf32>
    %11 = arith.mulf %9, %10 : vector<32x128xf32>
    %12 = vector.broadcast %1 : vector<32x1xf32> to vector<32x128xf32>
    %13 = arith.addf %11, %12 : vector<32x128xf32>
    %cst = arith.constant 0.000000e+00 : f32
    %14 = vector.broadcast %cst : f32 to vector<32x128xf32>
    %15 = arith.maximumf %13, %14 : vector<32x128xf32>
    %cst_12 = arith.constant dense<0.000000e+00> : vector<32x128xf32>
    %16 = tpu.matmul %2, %15, %cst_12 {dimension_numbers = #tpu.dot_dimension_numbers<[1], [0], [0], [1], [0, 0, 1, 1], [], []>} : vector<32x32xf32>, vector<32x128xf32>, vector<32x128xf32> -> vector<32x128xf32>
    %17 = vector.broadcast %3 : vector<32x1xf32> to vector<32x128xf32>
    %18 = arith.addf %16, %17 : vector<32x128xf32>
    %cst_13 = arith.constant 0.000000e+00 : f32
    %19 = vector.broadcast %cst_13 : f32 to vector<32x128xf32>
    %20 = arith.maximumf %18, %19 : vector<32x128xf32>
    %21 = vector.broadcast %4 : vector<32x1xf32> to vector<32x128xf32>
    %22 = arith.mulf %20, %21 : vector<32x128xf32>
    %cst_14 = arith.constant dense<0.000000e+00> : vector<128xf32>
    %23 = vector.multi_reduction <add>, %22, %cst_14 [0] : vector<32x128xf32> to vector<128xf32>
    %24 = vector.shape_cast %23 : vector<128xf32> to vector<1x128xf32>
    %25 = vector.broadcast %5 : vector<1x1xf32> to vector<1x128xf32>
    %26 = arith.addf %24, %25 : vector<1x128xf32>
    %c0_15 = arith.constant 0 : index
    %27 = arith.index_cast %6 : i32 to index
    %28 = vector.load %arg8[%c0_15, %27] : memref<1x128xf32, #tpu.memory_space<vmem>>, vector<1x128xf32>
    tpu.vector_store %arg8[%c0_15, %27], %26 {strides = array<i32>} : memref<1x128xf32, #tpu.memory_space<vmem>>, vector<1x128xf32>,
    return
  }
  func.func @transform_0(%arg0: i32) -> (i32, i32) {
    %c0_i32 = arith.constant 0 : i32
    %c0_i32_0 = arith.constant 0 : i32
    return %c0_i32, %arg0 : i32, i32
  }
  func.func @transform_1(%arg0: i32) -> (i32, i32) {
    %c0_i32 = arith.constant 0 : i32
    %c0_i32_0 = arith.constant 0 : i32
    %c0_i32_1 = arith.constant 0 : i32
    return %c0_i32, %c0_i32_0 : i32, i32
  }
  func.func @transform_2(%arg0: i32) -> (i32, i32) {
    %c0_i32 = arith.constant 0 : i32
    %c0_i32_0 = arith.constant 0 : i32
    %c0_i32_1 = arith.constant 0 : i32
    return %c0_i32, %c0_i32_0 : i32, i32
  }
  func.func @transform_3(%arg0: i32) -> (i32, i32) {
    %c0_i32 = arith.constant 0 : i32
    %c0_i32_0 = arith.constant 0 : i32
    %c0_i32_1 = arith.constant 0 : i32
    return %c0_i32, %c0_i32_0 : i32, i32
  }
  func.func @transform_4(%arg0: i32) -> (i32, i32) {
    %c0_i32 = arith.constant 0 : i32
    %c0_i32_0 = arith.constant 0 : i32
    %c0_i32_1 = arith.constant 0 : i32
    return %c0_i32, %c0_i32_0 : i32, i32
  }
  func.func @transform_5(%arg0: i32) -> (i32, i32) {
    %c0_i32 = arith.constant 0 : i32
    %c0_i32_0 = arith.constant 0 : i32
    %c0_i32_1 = arith.constant 0 : i32
    return %c0_i32, %c0_i32_0 : i32, i32
  }
  func.func @transform_6(%arg0: i32) -> (i32, i32) {
    %c0_i32 = arith.constant 0 : i32
    %c0_i32_0 = arith.constant 0 : i32
    %c0_i32_1 = arith.constant 0 : i32
    return %c0_i32, %c0_i32_0 : i32, i32
  }
  func.func @transform_7(%arg0: i32) -> (i32, i32) {
    %c0_i32 = arith.constant 0 : i32
    %c0_i32_0 = arith.constant 0 : i32
    return %c0_i32, %arg0 : i32, i32
  }
}

</mosaic_0001>

<bundles_post_ra>
// kernel: tpu_custom_call.1
= control target key start
LH: loop header
LB: loop body
LE: loop exit
PB: predicated region body
PF: predicated region fallthrough
CT: control target
= control target key end

     0   :  { %s388_s0 = inlined_call_operand.vmem [shape: f32[1,128], index: 0, kind: input, shape index: {}]   ;;  %s389_s1 = inlined_call_operand.vmem [shape: f32[32,1], index: 1, kind: input, shape index: {}]   ;;  %s390_s2 = inlined_call_operand.vmem [shape: f32[32,1], index: 2, kind: input, shape index: {}]   ;;  %s391_s3 = inlined_call_operand.vmem [shape: f32[32,32], index: 3, kind: input, shape index: {}]   ;;  %s392_s4 = inlined_call_operand.vmem [shape: f32[32,1], index: 4, kind: input, shape index: {}]   ;;  %s393_s5 = inlined_call_operand.vmem [shape: f32[32,1], index: 5, kind: input, shape index: {}]   ;;  %s394_s6 = inlined_call_operand.<no memory space> [shape: f32[1,1], index: 6, kind: input, shape index: {}]   ;;  %s395_s7 = inlined_call_operand.hbm [shape: f32[1,128], index: 7, kind: output, shape index: {}]  }
   0x1   :  { %v12_v0 = vstv %s394_s6 }
   0x2   :  { %13 = vst [vmem:[#allocation2] sm:$0x1] %v12_v0 }
   0x3   :  { %v36_v1 = vld [vmem:[%s390_s2 + $0x18] sm:$0xff]  ;;  %v35_v2 = vld [vmem:[%s390_s2 + $0x10] sm:$0xff]  ;;  %v277_v4 = vmov 0  }
   0x4   :  { %v32_v3 = vld [vmem:[%s389_s1 + $0x18] sm:$0xff]  ;;  %249 = vset.pattern.permute.xlu2 %v277_v4  ;;  %248 = vset.pattern.permute.xlu1 %v277_v4 }
   0x5   :  { %247 = vset.pattern.permute.xlu0 %v277_v4  ;;  %95 = vperm.xlu1 %248, %v36_v1  }
   0x6   :  { %90 = vperm.xlu2 %249, %v35_v2   ;;  %68 = vperm.xlu0 %247, %v32_v3  }
   0x7   :  { %14 = vsyncpa [#allocation4], 0  ;;  %v30_v5 = vld [vmem:[%s389_s1 + $0x8] sm:$0xff]  ;;  %v31_v6 = vld [vmem:[%s389_s1 + $0x10] sm:$0xff]  ;;  %vm126_vm0 = vcmask 261120   ;;  %s220_s18 = sshll.u32 %s395_s7, 4  ;;  %s221_s18 = int_to_ptr.hbm [resolvable:$true] %s220_s18 }
   0x8   :  { %v29_v7 = vld [vmem:[%s389_s1] sm:$0xff]  ;;  %v34_v9 = vld [vmem:[%s390_s2 + $0x8] sm:$0xff]  ;;  %v43_v11 = vld [vmem:[%s392_s4 + $0x10] sm:$0xff] }
   0x9   :  { %v33_v8 = vld [vmem:[%s390_s2] sm:$0xff]  ;;  %v42_v12 = vld [vmem:[%s392_s4 + $0x8] sm:$0xff]  ;;  %v44_v13 = vld [vmem:[%s392_s4 + $0x18] sm:$0xff] }
   0xa   :  { %v41_v10 = vld [vmem:[%s392_s4] sm:$0xff]  ;;  %v46_v14 = vld [vmem:[%s393_s5 + $0x8] sm:$0xff]  ;;  %v47_v16 = vld [vmem:[%s393_s5 + $0x10] sm:$0xff] }
   0xb   :  { %v45_v15 = vld [vmem:[%s393_s5] sm:$0xff]  ;;  %v48_v18 = vld [vmem:[%s393_s5 + $0x18] sm:$0xff]  ;;  %v38_v41 = vld [vmem:[%s391_s3 + $0x8] sm:$0xff] }
   0xc   :  { %v49_v17 = vld [vmem:[#allocation2] sm:$0x1]  ;;  %v39_v42 = vld [vmem:[%s391_s3 + $0x10] sm:$0xff]  ;;  %v40_v43 = vld [vmem:[%s391_s3 + $0x18] sm:$0xff] }
   0xd   :  { %58 = vperm.xlu1 %248, %v30_v5   ;;  %v250_v19 = vld [vmem:[%s388_s0] ss:$0 sm:$0xff] }
   0xe   :  { %63 = vperm.xlu0 %247, %v31_v6   ;;  %53 = vperm.xlu2 %249, %v29_v7   ;;  %v37_v40 = vld [vmem:[%s391_s3] sm:$0xff]  ;;  %s278_s3 = smov [#allocation3]  }
   0xf   :  { %s218_s15 = sshll.u32 %s278_s3, 4  ;;  %s219_s15 = int_to_ptr.vmem [resolvable:$true] %s218_s15 }
  0x15   :  { %80 = vperm.xlu1 %248, %v33_v8  }
  0x16   :  { %85 = vperm.xlu0 %247, %v34_v9   ;;  %108 = vperm.xlu2 %249, %v41_v10  }
  0x1d   :  { %118 = vperm.xlu1 %248, %v43_v11  }
  0x1e   :  { %113 = vperm.xlu0 %247, %v42_v12   ;;  %123 = vperm.xlu2 %249, %v44_v13  }
  0x25   :  { %179 = vperm.xlu1 %248, %v46_v14  }
  0x26   :  { %174 = vperm.xlu0 %247, %v45_v15   ;;  %184 = vperm.xlu2 %249, %v47_v16  }
  0x2d   :  { %207 = vperm.xlu1 %248, %v49_v17  }
  0x2e   :  { %189 = vperm.xlu0 %247, %v48_v18  }
  0x60   :  { %v91_v24 = vpop.permute.xlu2 %90 }
  0x68   :  { %v54_v31 = vpop.permute.xlu2 %53 }
  0x69   :  { %v74_v32 = vmul.f32 %v250_v19, %v54_v31 }
  0x70   :  { %v109_v44 = vpop.permute.xlu2 %108 }
  0x77   :  { %v96_v20 = vpop.permute.xlu1 %95 }
  0x78   :  { %v69_v21 = vpop.permute.xlu0 %68  ;;  %v124_v49 = vpop.permute.xlu2 %123 }
  0x79   :  { %v77_v22 = vmul.f32 %v250_v19, %v69_v21 }
  0x7b   :  { %v101_v23 = vadd.f32 %v96_v20, %v77_v22 }
  0x7d   :  { %v105_v25 = vmax.f32 %v101_v23, 0.0 }
  0x7f   :  { %151 = vmatpush.msra.mxu0 %v105_v25  ;;  %233 = vmatpush.msra.mxu1 %v105_v25  ;;  %v59_v26 = vpop.permute.xlu1 %58 }
  0x80   :  { %234 = vmatpush.msra.mxu2 %v105_v25  ;;  %235 = vmatpush.msra.mxu3 %v105_v25  ;;  %v64_v27 = vpop.permute.xlu0 %63  ;;  %v75_v33 = vmul.f32 %v250_v19, %v59_v26  ;;  %v185_v0 = vpop.permute.xlu2 %184 }
  0x81   :  { %v76_v28 = vmul.f32 %v250_v19, %v64_v27 }
  0x83   :  { %v100_v29 = vadd.f32 %v91_v24, %v76_v28 }
  0x85   :  { %v104_v30 = vmax.f32 %v100_v29, 0.0 }
  0x87   :  { %152 = vmatpush.msra.mxu0 %v104_v30  ;;  %236 = vmatpush.msra.mxu1 %v104_v30  ;;  %v81_v34 = vpop.permute.xlu1 %80 }
  0x88   :  { %237 = vmatpush.msra.mxu2 %v104_v30  ;;  %238 = vmatpush.msra.mxu3 %v104_v30  ;;  %v86_v35 = vpop.permute.xlu0 %85  ;;  %v98_v37 = vadd.f32 %v81_v34, %v74_v32 }
  0x89   :  { %v99_v36 = vadd.f32 %v86_v35, %v75_v33 }
  0x8a   :  { %v102_v39 = vmax.f32 %v98_v37, 0.0 }
  0x8b   :  { %v103_v38 = vmax.f32 %v99_v36, 0.0 }
  0x8d   :  { %153 = vmatpush.msra.mxu0 %v103_v38  ;;  %239 = vmatpush.msra.mxu1 %v103_v38 }
  0x8e   :  { %240 = vmatpush.msra.mxu2 %v103_v38  ;;  %241 = vmatpush.msra.mxu3 %v103_v38 }
  0x8f   :  { %154 = vmatpush.msra.mxu0 %v102_v39  ;;  %242 = vmatpush.msra.mxu1 %v102_v39  ;;  %v119_v46 = vpop.permute.xlu1 %118 }
  0x90   :  { %243 = vmatpush.msra.mxu2 %v102_v39  ;;  %244 = vmatpush.msra.mxu3 %v102_v39  ;;  %v114_v45 = vpop.permute.xlu0 %113 }
  0x91   :  { %229 = vmatmul.msk.f32.vlgmr.msra.gmra.mxu0 %vm126_vm0, %v37_v40  ;;  %230 = vmatmul.msk.f32.vlgmr.msra.gmra.mxu1 %vm126_vm0, %v38_v41 }
  0x92   :  { %231 = vmatmul.msk.f32.vlgmr.msra.gmra.mxu2 %vm126_vm0, %v39_v42  ;;  %232 = vmatmul.msk.f32.vlgmr.msra.gmra.mxu3 %vm126_vm0, %v40_v43 }
  0x97   :  { %v180_v55 = vpop.permute.xlu1 %179 }
  0x98   :  { %v175_v52 = vpop.permute.xlu0 %174 }
  0x9f   :  { %v208_v11 = vpop.permute.xlu1 %207 }
  0xa0   :  { %v190_v3 = vpop.permute.xlu0 %189  ;;  %v210_v13 = vperm.slane %v208_v11, 0 }
 0x10e   :  { %v156_v47 = vpop.f32.mrf.mxu0  ;;  %v159_v48 = vpop.f32.mrf.mxu1 }
 0x10f   :  { %v157_v50 = vadd.f32 %v156_v47, %v109_v44  ;;  %v160_v51 = vadd.f32 %v159_v48, %v114_v45 }
 0x111   :  { %v168_v53 = vmax.f32 %v157_v50, 0.0  ;;  %v169_v54 = vmax.f32 %v160_v51, 0.0 }
 0x113   :  { %v192_v58 = vmul.f32 %v175_v52, %v168_v53  ;;  %v193_v59 = vmul.f32 %v180_v55, %v169_v54 }
 0x115   :  { %v162_v56 = vpop.f32.mrf.mxu2  ;;  %v165_v57 = vpop.f32.mrf.mxu3  ;;  %v196_v1 = vadd.f32 %v193_v59, %v192_v58 }
 0x116   :  { %v163_v60 = vadd.f32 %v162_v56, %v119_v46  ;;  %v166_v61 = vadd.f32 %v165_v57, %v124_v49 }
 0x118   :  { %v170_v62 = vmax.f32 %v163_v60, 0.0  ;;  %v171_v63 = vmax.f32 %v166_v61, 0.0 }
 0x11a   :  { %v194_v2 = vmul.f32 %v185_v0, %v170_v62  ;;  %v195_v5 = vmul.f32 %v190_v3, %v171_v63 }
 0x11c   :  { %v197_v4 = vadd.f32 %v196_v1, %v194_v2 }
 0x11e   :  { %v198_v6 = vadd.f32 %v197_v4, %v195_v5 }
 0x120   :  { %v199_v7 = vrot.slane %v198_v6, 4 }
 0x122   :  { %v200_v8 = vadd.f32 %v199_v7, %v198_v6 }
 0x124   :  { %v201_v9 = vrot.slane %v200_v8, 2 }
 0x126   :  { %v202_v10 = vadd.f32 %v201_v9, %v200_v8 }
 0x128   :  { %v203_v12 = vrot.slane %v202_v10, 1 }
 0x12a   :  { %v204_v14 = vadd.f32 %v203_v12, %v202_v10 }
 0x12c   :  { %v211_v15 = vadd.f32 %v210_v13, %v204_v14 }
 0x12e   :  { %212 = vst [vmem:[#allocation3] sm:$0x1] %v211_v15 }
 0x12f   :  { %223 = dma.vmem_to_hbm [thread:$0]  %s219_s15, 16, %s221_s18, [#allocation4]  }
 0x130   :  { %275 = dma.done.wait [#allocation4], 16  }
 0x131   :  { %276 = vsyncadd [#allocation4], 4294967280 }
 0x132   :  { %228 = vsyncpa [#allocation4], 1 }

</bundles_post_ra>
